<compile_context>
chip_gen: v6e
topology: v6e:2x2x1
jax: 0.10.0
libtpu: 0.0.40
codegen_flags: <defaults>
</compile_context>

<pallas_src>
import functools

import numpy as np
import jax
import jax.numpy as jnp
from jax import lax
from jax.experimental import pallas as pl
from jax.experimental.pallas import tpu as pltpu

EPS = 1e-5  # PyTorch BatchNorm2d default eps


# ---------------------------------------------------------------------------------
# pass 1: conv1 (+ fused 1x1 projection), per-image BN-stat partials
# ---------------------------------------------------------------------------------
def _conv1_kernel(slab_ref, w_ref, a_ref, pstats_ref):
    # slab_ref: (Mn, 9*Cin) bf16 im2col patches; w_ref: (9*Cin, Cw) bf16
    a = jnp.dot(slab_ref[...], w_ref[...], preferred_element_type=jnp.float32)
    a_ref[...] = a
    pstats_ref[...] = jnp.concatenate(
        [jnp.sum(a, axis=0, keepdims=True),
         jnp.sum(a * a, axis=0, keepdims=True)], axis=0)


# ---------------------------------------------------------------------------------
# pass 2: BN1 + ReLU, conv2 via row-shifted taps, per-image BN2-stat partials
# ---------------------------------------------------------------------------------
def _conv2_kernel(a1_ref, stats1_ref, g1_ref, be1_ref, mask_ref, w2_ref,
                  a2_ref, pstats_ref, *, Mn, Mtot, Wo, Cout):
    inv_m = jnp.float32(1.0 / Mtot)
    mean = stats1_ref[0:1, :Cout] * inv_m
    var = stats1_ref[1:2, :Cout] * inv_m - mean * mean
    scale = g1_ref[...] * lax.rsqrt(var + EPS)
    shift = be1_ref[...] - mean * scale
    h = jnp.maximum(a1_ref[:, :Cout] * scale + shift, 0.0).astype(jnp.bfloat16)

    # conv2 patches: tap(dy,dx)[m] = h[m + (dy-1)*Wo + (dx-1)], zero outside the image.
    # Row over/underflow is absorbed by the zero guard rows; column wrap (x==0 / x==Wo-1)
    # is killed by the precomputed bf16 edge masks.
    zguard = jnp.zeros((Wo + 1, Cout), jnp.bfloat16)
    hp = jnp.concatenate([zguard, h, zguard], axis=0)
    not_left = mask_ref[:, 0:1]
    not_right = mask_ref[:, 1:2]
    taps = []
    for dy in range(3):
        for dx in range(3):
            o = (dy - 1) * Wo + (dx - 1)
            t = hp[Wo + 1 + o: Wo + 1 + o + Mn, :]
            if dx == 0:
                t = t * not_left
            elif dx == 2:
                t = t * not_right
            taps.append(t)
    slab2 = jnp.concatenate(taps, axis=-1)                      # (Mn, 9*Cout) bf16
    a2 = jnp.dot(slab2, w2_ref[...], preferred_element_type=jnp.float32)
    a2_ref[...] = a2
    pstats_ref[...] = jnp.concatenate(
        [jnp.sum(a2, axis=0, keepdims=True),
         jnp.sum(a2 * a2, axis=0, keepdims=True)], axis=0)


# ---------------------------------------------------------------------------------
# pass 3: BN2 + shortcut BN (or exact identity) + add, lane-dense store
# ---------------------------------------------------------------------------------
def _finalize_kernel(*refs, Mtot, Ho, Wo, Cout, use_proj):
    it = iter(refs)
    a2_ref = next(it); stats2_ref = next(it); g2_ref = next(it); be2_ref = next(it)
    if use_proj:
        a1_ref = next(it); stats1_ref = next(it); gsc_ref = next(it); besc_ref = next(it)
    else:
        xc_ref = next(it)
    o_ref = next(it)

    inv_m = jnp.float32(1.0 / Mtot)

    def bn_apply(a, s0, s1, g, b):
        mean = s0 * inv_m
        var = s1 * inv_m - mean * mean
        scale = g * lax.rsqrt(var + EPS)
        return a * scale + (b - mean * scale)

    y = bn_apply(a2_ref[...], stats2_ref[0:1, :], stats2_ref[1:2, :],
                 g2_ref[...], be2_ref[...])
    if use_proj:
        sc = bn_apply(a1_ref[:, Cout:], stats1_ref[0:1, Cout:], stats1_ref[1:2, Cout:],
                      gsc_ref[...], besc_ref[...])
    else:
        sc = xc_ref[...]                       # identity shortcut stays exact f32
    # lane-dense store: last dim Wo*Cout (== 128 for the stride-1 test shapes)
    o_ref[...] = (y + sc).reshape(Ho, Wo * Cout).astype(o_ref.dtype)


# ---------------------------------------------------------------------------------
# wrapper
# ---------------------------------------------------------------------------------
def _nbytes(shape, dtype):
    return int(np.prod(shape)) * jnp.dtype(dtype).itemsize


def _cparams(tile_bytes, extra_bytes=0):
    # per-tile blocks are double-buffered by the pipeline (x2); add in-kernel
    # intermediates and 2x headroom; clamp well inside v7x's 64 MiB physical VMEM.
    need = 2 * tile_bytes + extra_bytes
    lim = int(min(48 << 20, max(16 << 20, 2 * need)))
    return pltpu.CompilerParams(dimension_semantics=("parallel",),
                                vmem_limit_bytes=lim)


def block_forward(x_nchw, params, stride=1):
    """Pallas implementation of Block.forward.  x_nchw: (N, Cin, H, W) float32 (NCHW)."""
    w1, b1, g1, be1, w2, b2, g2, be2, proj = params
    del b1, b2  # cancelled exactly by training-mode BatchNorm mean subtraction
    N, Cin, H, W = x_nchw.shape
    Cout = w1.shape[0]
    Ho = (H - 1) // stride + 1
    Wo = (W - 1) // stride + 1
    Mn = Ho * Wo
    Mtot = N * Mn
    use_proj = proj is not None
    # A PyTorch Block with stride != 1 and an identity shortcut would shape-error.
    assert stride == 1 or use_proj, "stride != 1 requires the 1x1 projection shortcut"
    assert use_proj or Cin == Cout
    Cw = 2 * Cout if use_proj else Cout
    f32, bf16 = jnp.float32, jnp.bfloat16

    # ---- wrapper glue (layout plumbing only): NCHW->NHWC, im2col slab, weights ------
    x = jnp.transpose(x_nchw, (0, 2, 3, 1)).astype(f32)               # NHWC
    x_pad = jnp.pad(x, ((0, 0), (1, 1), (1, 1), (0, 0)))
    taps = [x_pad[:, dy:dy + (Ho - 1) * stride + 1:stride,
                     dx:dx + (Wo - 1) * stride + 1:stride, :]
            for dy in range(3) for dx in range(3)]
    slab1 = jnp.concatenate(taps, axis=-1).reshape(Mtot, 9 * Cin).astype(bf16)
    # TODO(synk): at production shapes, avoid the 9x-duplicated conv1 slab in HBM
    # (phase-decimated planes for stride=2 / K-chunked in-kernel taps) and tile image
    # rows with halo exchange so each tile fits v7x's 64 MiB VMEM.

    w1k = jnp.transpose(w1, (2, 3, 1, 0)).reshape(9 * Cin, Cout).astype(f32)
    if use_proj:
        wsc, _bsc, gsc, besc = proj
        wsc2d = wsc.reshape(Cout, Cin).T.astype(f32)                  # (Cin, Cout)
        wsc_wide = jnp.zeros((9 * Cin, Cout), f32).at[4 * Cin:5 * Cin, :].set(wsc2d)
        w1wide = jnp.concatenate([w1k, wsc_wide], axis=1).astype(bf16)  # (9*Cin, 2*Cout)
    else:
        w1wide = w1k.astype(bf16)
    w2k = jnp.transpose(w2, (2, 3, 1, 0)).reshape(9 * Cout, Cout).astype(bf16)
    vec = lambda v: v.reshape(1, -1).astype(f32)

    # interior-column masks (same for every image), bf16 0/1
    col = jnp.arange(Mn) % Wo
    edge_mask = jnp.stack([col != 0, col != Wo - 1], axis=1).astype(bf16)   # (Mn, 2)

    # ---- pass 1: conv1 (+ fused projection), per-image BN-stat partials -------------
    t1 = (_nbytes((Mn, 9 * Cin), bf16) + _nbytes((9 * Cin, Cw), bf16) +
          _nbytes((Mn, Cw), f32) + _nbytes((2, Cw), f32))
    a1, pstats1 = pl.pallas_call(
        _conv1_kernel,
        grid=(N,),
        in_specs=[pl.BlockSpec((Mn, 9 * Cin), lambda n: (n, 0)),
                  pl.BlockSpec((9 * Cin, Cw), lambda n: (0, 0))],
        out_specs=(pl.BlockSpec((Mn, Cw), lambda n: (n, 0)),
                   pl.BlockSpec((None, 2, Cw), lambda n: (n, 0, 0))),
        out_shape=(jax.ShapeDtypeStruct((Mtot, Cw), f32),
                   jax.ShapeDtypeStruct((N, 2, Cw), f32)),
        compiler_params=_cparams(t1, extra_bytes=2 * _nbytes((Mn, Cw), f32)),
    )(slab1, w1wide)
    stats1 = jnp.sum(pstats1, axis=0)                                  # (2, Cw)

    # ---- pass 2: BN1 + ReLU + conv2, per-image BN2-stat partials ---------------------
    t2 = (_nbytes((Mn, Cw), f32) + _nbytes((2, Cw), f32) + 2 * _nbytes((1, Cout), f32) +
          _nbytes((Mn, 2), bf16) + _nbytes((9 * Cout, Cout), bf16) +
          _nbytes((Mn, Cout), f32) + _nbytes((2, Cout), f32))
    x2 = 2 * _nbytes((Mn, Cout), f32) + 2 * _nbytes((Mn, 9 * Cout), bf16)
    kern2 = functools.partial(_conv2_kernel, Mn=Mn, Mtot=Mtot, Wo=Wo, Cout=Cout)
    a2, pstats2 = pl.pallas_call(
        kern2,
        grid=(N,),
        in_specs=[pl.BlockSpec((Mn, Cw), lambda n: (n, 0)),
                  pl.BlockSpec((2, Cw), lambda n: (0, 0)),
                  pl.BlockSpec((1, Cout), lambda n: (0, 0)),
                  pl.BlockSpec((1, Cout), lambda n: (0, 0)),
                  pl.BlockSpec((Mn, 2), lambda n: (0, 0)),
                  pl.BlockSpec((9 * Cout, Cout), lambda n: (0, 0))],
        out_specs=(pl.BlockSpec((Mn, Cout), lambda n: (n, 0)),
                   pl.BlockSpec((None, 2, Cout), lambda n: (n, 0, 0))),
        out_shape=(jax.ShapeDtypeStruct((Mtot, Cout), f32),
                   jax.ShapeDtypeStruct((N, 2, Cout), f32)),
        compiler_params=_cparams(t2, extra_bytes=x2),
    )(a1, stats1, vec(g1), vec(be1), edge_mask, w2k)
    stats2 = jnp.sum(pstats2, axis=0)                                  # (2, Cout)

    # ---- pass 3: BN2 + shortcut + add, lane-dense output -----------------------------
    in3 = [a2, stats2, vec(g2), vec(be2)]
    specs3 = [pl.BlockSpec((Mn, Cout), lambda n: (n, 0)),
              pl.BlockSpec((2, Cout), lambda n: (0, 0)),
              pl.BlockSpec((1, Cout), lambda n: (0, 0)),
              pl.BlockSpec((1, Cout), lambda n: (0, 0))]
    if use_proj:
        in3 += [a1, stats1, vec(gsc), vec(besc)]
        specs3 += [pl.BlockSpec((Mn, Cw), lambda n: (n, 0)),
                   pl.BlockSpec((2, Cw), lambda n: (0, 0)),
                   pl.BlockSpec((1, Cout), lambda n: (0, 0)),
                   pl.BlockSpec((1, Cout), lambda n: (0, 0))]
    else:
        in3 += [x.reshape(Mtot, Cin)]
        specs3 += [pl.BlockSpec((Mn, Cin), lambda n: (n, 0))]
    t3 = (_nbytes((Mn, Cw), f32) + _nbytes((Mn, Cout), f32) +
          _nbytes((Ho, Wo * Cout), f32) + 4096)
    kern3 = functools.partial(_finalize_kernel, Mtot=Mtot, Ho=Ho, Wo=Wo, Cout=Cout,
                              use_proj=use_proj)
    out2d = pl.pallas_call(
        kern3,
        grid=(N,),
        in_specs=specs3,
        out_specs=pl.BlockSpec((Ho, Wo * Cout), lambda n: (n, 0)),
        out_shape=jax.ShapeDtypeStruct((N * Ho, Wo * Cout), f32),
        compiler_params=_cparams(t3, extra_bytes=2 * _nbytes((Mn, Cout), f32)),
    )(*in3)
    return jnp.transpose(out2d.reshape(N, Ho, Wo, Cout), (0, 3, 1, 2))


# ---------------- pure-JAX reference (correctness check only, full f32) ----------------
def block_reference(x_nchw, params, stride=1):
    w1, b1, g1, be1, w2, b2, g2, be2, proj = params
    x = jnp.transpose(x_nchw, (0, 2, 3, 1)).astype(jnp.float32)

    def conv(z, w_oihw, b, s, pad):
        w = jnp.transpose(w_oihw, (2, 3, 1, 0))
        y = lax.conv_general_dilated(z, w, (s, s), [(pad, pad), (pad, pad)],
                                     dimension_numbers=('NHWC', 'HWIO', 'NHWC'))
        return y + b.reshape(1, 1, 1, -1)

    def bn(z, g, b):
        m = z.mean(axis=(0, 1, 2), keepdims=True)
        v = ((z - m) ** 2).mean(axis=(0, 1, 2), keepdims=True)
        return (z - m) * lax.rsqrt(v + EPS) * g.reshape(1, 1, 1, -1) + b.reshape(1, 1, 1, -1)

    h = jax.nn.relu(bn(conv(x, w1, b1, stride, 1), g1, be1))
    h = bn(conv(h, w2, b2, 1, 1), g2, be2)
    if proj is not None:
        wsc, bsc, gsc, besc = proj
        sc = bn(conv(x, wsc, bsc, stride, 0), gsc, besc)
    else:
        sc = x
    return jnp.transpose(sc + h, (0, 3, 1, 2))


def make_params(key, cin, cout):
    ks = jax.random.split(key, 12)
    w1 = 0.1 * jax.random.normal(ks[0], (cout, cin, 3, 3), jnp.float32)
    b1 = 0.1 * jax.random.normal(ks[1], (cout,), jnp.float32)
    g1 = 1.0 + 0.1 * jax.random.normal(ks[2], (cout,), jnp.float32)
    be1 = 0.1 * jax.random.normal(ks[3], (cout,), jnp.float32)
    w2 = 0.1 * jax.random.normal(ks[4], (cout, cout, 3, 3), jnp.float32)
    b2 = 0.1 * jax.random.normal(ks[5], (cout,), jnp.float32)
    g2 = 1.0 + 0.1 * jax.random.normal(ks[6], (cout,), jnp.float32)
    be2 = 0.1 * jax.random.normal(ks[7], (cout,), jnp.float32)
    if cin != cout:
        proj = (0.1 * jax.random.normal(ks[8], (cout, cin, 1, 1), jnp.float32),
                0.1 * jax.random.normal(ks[9], (cout,), jnp.float32),
                1.0 + 0.1 * jax.random.normal(ks[10], (cout,), jnp.float32),
                0.1 * jax.random.normal(ks[11], (cout,), jnp.float32))
    else:
        proj = None
    return (w1, b1, g1, be1, w2, b2, g2, be2, proj)


if __name__ == "__main__":
    key = jax.random.PRNGKey(0)
    kx1, kp1, kx2, kp2, kx3, kp3 = jax.random.split(key, 6)
    # Tolerance sized for bf16 MXU operands vs. the all-f32 reference.
    TOL = dict(rtol=3e-2, atol=3e-2)

    # Config A: in_chan != out_chan -> 1x1-conv + BN projection shortcut (stride 1).
    x1 = jax.random.normal(kx1, (2, 4, 16, 16), jnp.float32)     # NCHW, like PyTorch
    p1 = make_params(kp1, 4, 8)
    out1 = block_forward(x1, p1, stride=1)
    jax.block_until_ready(out1)
    np.testing.assert_allclose(np.asarray(out1),
                               np.asarray(block_reference(x1, p1, stride=1)), **TOL)

    # Config B: in_chan == out_chan -> identity shortcut (stride 1).
    x2 = jax.random.normal(kx2, (2, 8, 16, 16), jnp.float32)
    p2 = make_params(kp2, 8, 8)
    out2 = block_forward(x2, p2, stride=1)
    jax.block_until_ready(out2)
    np.testing.assert_allclose(np.asarray(out2),
                               np.asarray(block_reference(x2, p2, stride=1)), **TOL)

    # Config C: downsampling block (stride 2) with projection shortcut.
    x3 = jax.random.normal(kx3, (2, 4, 16, 16), jnp.float32)
    p3 = make_params(kp3, 4, 8)
    out3 = block_forward(x3, p3, stride=2)
    jax.block_until_ready(out3)
    np.testing.assert_allclose(np.asarray(out3),
                               np.asarray(block_reference(x3, p3, stride=2)), **TOL)

    print("KERNEL_OK")
</pallas_src>

<mosaic_0001>
module attributes {stable_mosaic.version = 11 : i64} {
  func.func @_conv1_kernel(%arg0: i32, %arg1: memref<256x36xbf16, #tpu.memory_space<vmem>>, %arg2: memref<36x16xbf16, #tpu.memory_space<vmem>>, %arg3: memref<256x16xf32, #tpu.memory_space<vmem>>, %arg4: memref<1x2x16xf32, #tpu.memory_space<vmem>>) attributes {dimension_semantics = [#tpu.dimension_semantics<parallel>], iteration_bounds = array<i64: 2>, scalar_prefetch = 0 : i64, scratch_operands = 0 : i64, tpu.core_type = #tpu.core_type<tc>, window_params = [{transform_indices = @transform_0, window_bounds = array<i64: 256, 36>}, {pipeline_mode = #tpu.pipeline_mode<synchronous>, transform_indices = @transform_1, window_bounds = array<i64: 36, 16>}, {transform_indices = @transform_2, window_bounds = array<i64: 256, 16>}, {transform_indices = @transform_3, window_bounds = array<i64: 1, 2, 16>}]} {
    %c0 = arith.constant 0 : index
    %c0_0 = arith.constant 0 : index
    %0 = vector.load %arg1[%c0, %c0_0] : memref<256x36xbf16, #tpu.memory_space<vmem>>, vector<256x36xbf16>
    %c0_1 = arith.constant 0 : index
    %c0_2 = arith.constant 0 : index
    %1 = vector.load %arg2[%c0_1, %c0_2] : memref<36x16xbf16, #tpu.memory_space<vmem>>, vector<36x16xbf16>
    %cst = arith.constant dense<0.000000e+00> : vector<256x16xf32>
    %2 = tpu.matmul %0, %1, %cst {dimension_numbers = #tpu.dot_dimension_numbers<[1], [0], [0], [1], [0, 0, 1, 1], [], []>} : vector<256x36xbf16>, vector<36x16xbf16>, vector<256x16xf32> -> vector<256x16xf32>
    %c0_3 = arith.constant 0 : index
    %c0_4 = arith.constant 0 : index
    %3 = vector.load %arg3[%c0_3, %c0_4] : memref<256x16xf32, #tpu.memory_space<vmem>>, vector<256x16xf32>
    tpu.vector_store %arg3[%c0_3, %c0_4], %2 {strides = array<i32>} : memref<256x16xf32, #tpu.memory_space<vmem>>, vector<256x16xf32>,
    %cst_5 = arith.constant dense<0.000000e+00> : vector<16xf32>
    %4 = vector.multi_reduction <add>, %2, %cst_5 [0] : vector<256x16xf32> to vector<16xf32>
    %5 = vector.shape_cast %4 : vector<16xf32> to vector<1x16xf32>
    %6 = arith.mulf %2, %2 : vector<256x16xf32>
    %cst_6 = arith.constant dense<0.000000e+00> : vector<16xf32>
    %7 = vector.multi_reduction <add>, %6, %cst_6 [0] : vector<256x16xf32> to vector<16xf32>
    %8 = vector.shape_cast %7 : vector<16xf32> to vector<1x16xf32>
    %9 = tpu.concatenate %5, %8 in 0 : vector<1x16xf32>, vector<1x16xf32> -> vector<2x16xf32>
    %c0_7 = arith.constant 0 : index
    %c0_8 = arith.constant 0 : index
    %c0_9 = arith.constant 0 : index
    %10 = vector.load %arg4[%c0_7, %c0_8, %c0_9] : memref<1x2x16xf32, #tpu.memory_space<vmem>>, vector<1x2x16xf32>
    %11 = vector.shape_cast %10 : vector<1x2x16xf32> to vector<2x16xf32>
    %12 = vector.shape_cast %9 : vector<2x16xf32> to vector<1x2x16xf32>
    tpu.vector_store %arg4[%c0_7, %c0_8, %c0_9], %12 {strides = array<i32>} : memref<1x2x16xf32, #tpu.memory_space<vmem>>, vector<1x2x16xf32>,
    return
  }
  func.func @transform_0(%arg0: i32) -> (i32, i32) {
    %c0_i32 = arith.constant 0 : i32
    %c0_i32_0 = arith.constant 0 : i32
    return %arg0, %c0_i32 : i32, i32
  }
  func.func @transform_1(%arg0: i32) -> (i32, i32) {
    %c0_i32 = arith.constant 0 : i32
    %c0_i32_0 = arith.constant 0 : i32
    %c0_i32_1 = arith.constant 0 : i32
    return %c0_i32, %c0_i32_0 : i32, i32
  }
  func.func @transform_2(%arg0: i32) -> (i32, i32) {
    %c0_i32 = arith.constant 0 : i32
    %c0_i32_0 = arith.constant 0 : i32
    return %arg0, %c0_i32 : i32, i32
  }
  func.func @transform_3(%arg0: i32) -> (i32, i32, i32) {
    %c0_i32 = arith.constant 0 : i32
    %c0_i32_0 = arith.constant 0 : i32
    %c0_i32_1 = arith.constant 0 : i32
    return %arg0, %c0_i32, %c0_i32_0 : i32, i32, i32
  }
}

</mosaic_0001>

<bundles_post_ra>
// kernel: tpu_custom_call.1
= control target key start
LH: loop header
LB: loop body
LE: loop exit
PB: predicated region body
PF: predicated region fallthrough
CT: control target
= control target key end

     0   :  { %9 = vsyncpa [#allocation3], 0  ;;  %s1468_s0 = inlined_call_operand.vmem [shape: bf16[512,36], index: 0, kind: input, shape index: {}]   ;;  %s1469_s1 = inlined_call_operand.vmem [shape: bf16[36,16], index: 1, kind: input, shape index: {}]   ;;  %s1470_s2 = inlined_call_operand.vmem [shape: f32[512,16], index: 2, kind: output, shape index: {0}]   ;;  %s1471_s3 = inlined_call_operand.hbm [shape: f32[2,2,16], index: 3, kind: output, shape index: {1}]  }
   0x1   :  { %11 = vsyncpa [#allocation3 + $0x1], 0  ;;  %s1100_s12 = smov 0   ;;  %s1102_s13 = smov 0  }
   0x2   :  { %s1104_s14 = smov 0   ;;  %s1106_s15 = smov 0  }
   0x3 LB: > { %s845_s16 = sadd.s32 4294967295, %s1077_s15   ;;  %s846_s17 = sadd.s32 4294967294, %s1077_s15   ;;  %s1077_s15 = sphi %s1106_s15, %s1477_s15   ;;  %s1073_s14 = sphi %s1104_s14, %s1476_s14   ;;  %s1069_s13 = sphi %s1102_s13, %s1475_s13   ;;  %s1065_s12 = sphi %s1100_s12, %s1474_s12  }
   0x4   : > { %s1123_s18 = sadd.s32 1, %s1077_s15   ;;  %s97_s19 = sadd.s32 1, %s1073_s14 }
   0x5   : > { %s94_s20 = ssub.s32 %s1077_s15, %s1123_s18  ;;  %p107_p0 = scmp.ne.s32.totalorder %s1073_s14, %s1069_s13 }
   0x6   : > { %p95_p1 = scmp.eq.s32.totalorder %s94_s20, 0  ;;  %p108_p2 = scmp.eq.s32.totalorder %s845_s16, 1 }
   0x7   : > { %p113_p3 = scmp.ne.s32.totalorder %s1069_s13, %s1065_s12  ;;  %p114_p4 = scmp.eq.s32.totalorder %s846_s17, 1 }
   0x8   : > { %s1133_s21 = scalar_select %p95_p1, %s1073_s14, %s97_s19  }
   0x9   : > { %p1135_p5 = por %p108_p2, %p107_p0  ;;  %p1139_p6 = por %p114_p4, %p113_p3 }
   0xa   : > { %p849_p7 = scmp.ge.s32.totalorder %s1077_s15, 1  ;;  %p144_p8 = scmp.lt.s32.totalorder %s1077_s15, 3 }
   0xc   : > { %p145_p9 = pnand %p849_p7, %p144_p8 }
   0xd   : > { %s1151_s28 = sshll.u32 (!%p145_p9), %s845_s16, 5  ;;  %s170_s17 = sand.u32 (!%p145_p9), 1, %s1069_s13  }
   0xe   : > { %148 = sbr.rel (%p145_p9) target bundleno = 322 (0x142), region = 28  ;;  %p174_p10 = scmp.lt.s32.totalorder (!%p145_p9), %s1151_s28, 63 }
   0xf   : > { %s850_s19 = sshll.u32 (!%p145_p9), %s170_s17, 1  ;;  %s1433_s27 = scalar_lea.hbm (!%p145_p9), %s1471_s3, %s1151_s28 }
  0x10   : > { %s172_s20 = scalar_lea.vmem (!%p145_p9), [#allocation2], %s850_s19  ;;  %s745_s29 = scalar_lea.sflag (!%p145_p9), [#allocation3], %s170_s17 }
  0x11   : > { %s762_s24 = sshll.u32 (!%p145_p9), %s172_s20, 4  ;;  %s763_s24 = int_to_ptr.vmem [resolvable:$true] %s762_s24 }
  0x12   : > { %s1017_s30 = scalar_lea.vmem (!%p145_p9), %s763_s24, 32 }
  0x13   : > { %v998_v0 = vld [vmem:[%s1469_s1 + $0x10] ss:$0 sps:$4 sm:$0x33]   ;;  %vm367_vm0 = vcmask 1041408   ;;  %v999_v1 = vld [vmem:[%s1469_s1 + $0x8] sm:$0xff]   ;;  %v1000_v3 = vld [vmem:[%s1469_s1] sm:$0xff]   ;;  %p1018_p11 = scmp.ne.s32.totalorder %s763_s24, %s1017_s30 }
  0x14   : > { %957 = vmatprep.subr.msk.bf16.mxu0 %vm367_vm0, %v998_v0  ;;  %v369_v2 = vsel %vm367_vm0, %v998_v0, 0  ;;  %958 = vmatprep.subr.msk.bf16.mxu1 %vm367_vm0, %v998_v0  ;;  %s1158_s4 = scalar_select %p174_p10, %s1151_s28, 63  ;;  %vm318_vm1 = vcmask 293888   ;;  %vm532_vm2 = vcmask 130048   ;;  %vm735_vm3 = vcmask 1040384  }
  0x15   : > { %914 = vmatpush3.bf16.msra.mxu0 %v369_v2  ;;  %954 = vmatpush3.bf16.msra.mxu1 %v369_v2  ;;  %vm737_vm4 = vcmask 123904   ;;  %p1019_p12 = pnand %p1018_p11, %p1135_p5 }
  0x16   : > { %915 = vmatprep.subr.bf16.mxu0 %v999_v1  ;;  %952 = vmatprep.subr.bf16.mxu1 %v999_v1  ;;  %s852_s5 = sshll.u32 %s1158_s4, 2  ;;  %s854_s9 = sshll.u32 %s1158_s4, 3 }
  0x17   : > { %s1164_s8 = scalar_lea.vmem %s1468_s0, %s852_s5  ;;  %s1202_s16 = scalar_lea.vmem %s1470_s2, %s854_s9 }
  0x18   : > { %v1001_v4 = vld [vmem:[%s1164_s8] sm:$0xff]   ;;  %v1002_v5 = vld [vmem:[%s1164_s8 + $0x8] sm:$0xff]   ;;  %v1003_v6 = vld [vmem:[%s1164_s8 + $0x10] sm:$0xff]   ;;  %p1020_p13 = pneg %p1019_p12  ;;  %s1079_s4 = smov [#allocation2]  }
  0x19   : > { %916 = vmatpush3.bf16.msra.mxu0 %v999_v1  ;;  %955 = vmatpush3.bf16.msra.mxu1 %v999_v1  ;;  %v1004_v7 = vld [vmem:[%s1164_s8 + $0x18] sm:$0xff]   ;;  %v1005_v8 = vld [vmem:[%s1164_s8 + $0x20] sm:$0xff]   ;;  %v1010_v10 = vld [vmem:[%s1164_s8 + $0x48] sm:$0xff]   ;;  %s1021_s5 = sshll.u32 %s1079_s4, 4  ;;  %s1022_s5 = int_to_ptr.vmem [resolvable:$false] %s1021_s5 }
  0x1a   : > { %917 = vmatprep.subr.bf16.mxu0 %v1000_v3  ;;  %953 = vmatprep.subr.bf16.mxu1 %v1000_v3  ;;  %v1009_v9 = vld [vmem:[%s1164_s8 + $0x40] sm:$0xff]   ;;  %v1011_v11 = vld [vmem:[%s1164_s8 + $0x50] sm:$0xff]   ;;  %v1012_v12 = vld [vmem:[%s1164_s8 + $0x58] sm:$0xff]   ;;  %s1023_s6 = scalar_lea.vmem %s1022_s5, 64  ;;  %p1024_p0 = scmp.lt.s32.totalorder %s763_s24, %s1022_s5 }
  0x1b   : > { %919 = vmatprep.mubr.msk.bf16.mxu0 %vm318_vm1, %v1001_v4  ;;  %935 = vmatprep.mubr.msk.bf16.mxu1 %vm318_vm1, %v1009_v9  ;;  %v1013_v13 = vld [vmem:[%s1164_s8 + $0x60] sm:$0xff]   ;;  %v1006_v14 = vld [vmem:[%s1164_s8 + $0x28] sm:$0xff]   ;;  %v1007_v15 = vld [vmem:[%s1164_s8 + $0x30] sm:$0xff]   ;;  %p1025_p1 = scmp.lt.s32.totalorder %s1023_s6, %s1017_s30 }
  0x1c   : > { %v1014_v16 = vld [vmem:[%s1164_s8 + $0x68] sm:$0xff]   ;;  %v1015_v17 = vld [vmem:[%s1164_s8 + $0x70] sm:$0xff]   ;;  %v1008_v18 = vld [vmem:[%s1164_s8 + $0x38] sm:$0xff]  }
  0x1d   : > { %918 = vmatpush3.bf16.msra.mxu0 %v1000_v3  ;;  %956 = vmatpush3.bf16.msra.mxu1 %v1000_v3  ;;  %v1016_v19 = vld [vmem:[%s1164_s8 + $0x78] sm:$0xff]   ;;  %p1026_p2 = por %p1025_p1, %p1024_p0 }
  0x1f   : > { %p1027_p3 = pnand %p1026_p2, %p1020_p13 }
  0x20   : > { %920 = vmatmul.mubr.msk.bf16.vlgmr.msra.gmra.mxu0 %vm318_vm1, %v1002_v5  ;;  %936 = vmatmul.mubr.msk.bf16.vlgmr.msra.gmra.mxu1 %vm318_vm1, %v1010_v10 }
  0x21   : > { %923 = vmatprep.mubr.msk.bf16.mxu0 %vm318_vm1, %v1003_v6  ;;  %939 = vmatprep.mubr.msk.bf16.mxu1 %vm318_vm1, %v1011_v11 }
  0x28   : > { %924 = vmatmul.mubr.msk.bf16.gmra.mxu0 %vm318_vm1, %v1004_v7  ;;  %940 = vmatmul.mubr.msk.bf16.gmra.mxu1 %vm318_vm1, %v1012_v12 }
  0x29   : > { %927 = vmatprep.mubr.msk.bf16.mxu0 %vm318_vm1, %v1005_v8  ;;  %943 = vmatprep.mubr.msk.bf16.mxu1 %vm318_vm1, %v1013_v13 }
  0x30   : > { %928 = vmatmul.mubr.msk.bf16.gmra.mxu0 %vm318_vm1, %v1006_v14  ;;  %944 = vmatmul.mubr.msk.bf16.gmra.mxu1 %vm318_vm1, %v1014_v16 }
  0x31   : > { %931 = vmatprep.mubr.msk.bf16.mxu0 %vm318_vm1, %v1007_v15  ;;  %947 = vmatprep.mubr.msk.bf16.mxu1 %vm318_vm1, %v1015_v17 }
  0x38   : > { %932 = vmatmul.mubr.msk.bf16.gmra.mxu0 %vm318_vm1, %v1008_v18  ;;  %948 = vmatmul.mubr.msk.bf16.gmra.mxu1 %vm318_vm1, %v1016_v19 }
  0xe0   : > { %v921_v20 = vpop.f32.mrf.mxu0  ;;  %v1210_v25 = vpop.f32.mrf.mxu1 }
  0xe1   : > { %535 = vst.msk [vmem:[%s1202_s16 + $0x10] sm:$0xff] %vm532_vm2, %v921_v20  ;;  %v636_v26 = vmul.f32 %v921_v20, %v921_v20  ;;  %551 = vst.msk [vmem:[%s1202_s16 + $0x90] sm:$0xff] %vm532_vm2, %v1210_v25  ;;  %v568_v33 = vsel %vm532_vm2, %v921_v20, 0.0 }
  0xe2   : > { %v405_v21 = vpop.f32.mrf.mxu0  ;;  %v1219_v32 = vpop.f32.mrf.mxu1 }
  0xe3   : > { %533 = vst.msk [vmem:[%s1202_s16] sm:$0xff] %vm532_vm2, %v405_v21  ;;  %v634_v23 = vmul.f32 %v405_v21, %v405_v21  ;;  %v565_v27 = vsel %vm532_vm2, %v405_v21, 0.0  ;;  %549 = vst.msk [vmem:[%s1202_s16 + $0x80] sm:$0xff] %vm532_vm2, %v1219_v32  ;;  %v669_v41 = vsel %vm532_vm2, %v636_v26, 0.0 }
  0xe4   : > { %v922_v22 = vpop.f32.mrf.mxu0  ;;  %v1229_v40 = vpop.f32.mrf.mxu1 }
  0xe5   : > { %536 = vst.msk [vmem:[%s1202_s16 + $0x18] sm:$0xff] %vm532_vm2, %v922_v22  ;;  %v666_v34 = vsel %vm532_vm2, %v634_v23, 0.0  ;;  %v637_v35 = vmul.f32 %v922_v22, %v922_v22  ;;  %v570_v42 = vsel %vm532_vm2, %v922_v22, 0.0  ;;  %552 = vst.msk [vmem:[%s1202_s16 + $0x98] sm:$0xff] %vm532_vm2, %v1229_v40 }
  0xe6   : > { %v408_v24 = vpop.f32.mrf.mxu0  ;;  %v1238_v47 = vpop.f32.mrf.mxu1 }
  0xe7   : > { %534 = vst.msk [vmem:[%s1202_s16 + $0x8] sm:$0xff] %vm532_vm2, %v408_v24  ;;  %v566_v28 = vsel %vm532_vm2, %v408_v24, 0.0  ;;  %v635_v29 = vmul.f32 %v408_v24, %v408_v24  ;;  %v671_v48 = vsel %vm532_vm2, %v637_v35, 0.0  ;;  %550 = vst.msk [vmem:[%s1202_s16 + $0x88] sm:$0xff] %vm532_vm2, %v1238_v47 }
  0xe8   : > { %v567_v30 = vadd.f32 %v566_v28, %v565_v27  ;;  %v925_v31 = vpop.f32.mrf.mxu0  ;;  %v1247_v53 = vpop.f32.mrf.mxu1 }
  0xe9   : > { %v667_v36 = vsel %vm532_vm2, %v635_v29, 0.0  ;;  %539 = vst.msk [vmem:[%s1202_s16 + $0x30] sm:$0xff] %vm532_vm2, %v925_v31  ;;  %v640_v54 = vmul.f32 %v925_v31, %v925_v31  ;;  %555 = vst.msk [vmem:[%s1202_s16 + $0xb0] sm:$0xff] %vm532_vm2, %v1247_v53  ;;  %v576_v62 = vsel %vm532_vm2, %v925_v31, 0.0 }
  0xea   : > { %v569_v37 = vadd.f32 %v568_v33, %v567_v30  ;;  %v668_v38 = vadd.f32 %v667_v36, %v666_v34  ;;  %v421_v39 = vpop.f32.mrf.mxu0  ;;  %v1256_v61 = vpop.f32.mrf.mxu1 }
  0xeb   : > { %537 = vst.msk [vmem:[%s1202_s16 + $0x20] sm:$0xff] %vm532_vm2, %v421_v39  ;;  %v638_v43 = vmul.f32 %v421_v39, %v421_v39  ;;  %v572_v49 = vsel %vm532_vm2, %v421_v39, 0.0  ;;  %553 = vst.msk [vmem:[%s1202_s16 + $0xa0] sm:$0xff] %vm532_vm2, %v1256_v61  ;;  %v677_v5 = vsel %vm532_vm2, %v640_v54, 0.0 }
  0xec   : > { %v670_v44 = vadd.f32 %v669_v41, %v668_v38  ;;  %v571_v45 = vadd.f32 %v570_v42, %v569_v37  ;;  %v926_v46 = vpop.f32.mrf.mxu0  ;;  %v1265_v4 = vpop.f32.mrf.mxu1 }
  0xed   : > { %540 = vst.msk [vmem:[%s1202_s16 + $0x38] sm:$0xff] %vm532_vm2, %v926_v46  ;;  %v673_v55 = vsel %vm532_vm2, %v638_v43, 0.0  ;;  %v641_v63 = vmul.f32 %v926_v46, %v926_v46  ;;  %v578_v6 = vsel %vm532_vm2, %v926_v46, 0.0  ;;  %556 = vst.msk [vmem:[%s1202_s16 + $0xb8] sm:$0xff] %vm532_vm2, %v1265_v4 }
  0xee   : > { %v573_v50 = vadd.f32 %v572_v49, %v571_v45  ;;  %v672_v51 = vadd.f32 %v671_v48, %v670_v44  ;;  %v424_v52 = vpop.f32.mrf.mxu0  ;;  %v1274_v11 = vpop.f32.mrf.mxu1 }
  0xef   : > { %538 = vst.msk [vmem:[%s1202_s16 + $0x28] sm:$0xff] %vm532_vm2, %v424_v52  ;;  %v574_v56 = vsel %vm532_vm2, %v424_v52, 0.0  ;;  %v639_v57 = vmul.f32 %v424_v52, %v424_v52  ;;  %v679_v12 = vsel %vm532_vm2, %v641_v63, 0.0  ;;  %554 = vst.msk [vmem:[%s1202_s16 + $0xa8] sm:$0xff] %vm532_vm2, %v1274_v11 }
  0xf0   : > { %v674_v58 = vadd.f32 %v673_v55, %v672_v51  ;;  %v575_v59 = vadd.f32 %v574_v56, %v573_v50  ;;  %v929_v60 = vpop.f32.mrf.mxu0  ;;  %v1283_v17 = vpop.f32.mrf.mxu1 }
  0xf1   : > { %v675_v0 = vsel %vm532_vm2, %v639_v57, 0.0  ;;  %543 = vst.msk [vmem:[%s1202_s16 + $0x50] sm:$0xff] %vm532_vm2, %v929_v60  ;;  %v644_v18 = vmul.f32 %v929_v60, %v929_v60  ;;  %559 = vst.msk [vmem:[%s1202_s16 + $0xd0] sm:$0xff] %vm532_vm2, %v1283_v17  ;;  %v584_v27 = vsel %vm532_vm2, %v929_v60, 0.0 }
  0xf2   : > { %v577_v1 = vadd.f32 %v576_v62, %v575_v59  ;;  %v676_v2 = vadd.f32 %v675_v0, %v674_v58  ;;  %v437_v3 = vpop.f32.mrf.mxu0  ;;  %v1292_v26 = vpop.f32.mrf.mxu1 }
  0xf3   : > { %541 = vst.msk [vmem:[%s1202_s16 + $0x40] sm:$0xff] %vm532_vm2, %v437_v3  ;;  %v642_v7 = vmul.f32 %v437_v3, %v437_v3  ;;  %v580_v13 = vsel %vm532_vm2, %v437_v3, 0.0  ;;  %557 = vst.msk [vmem:[%s1202_s16 + $0xc0] sm:$0xff] %vm532_vm2, %v1292_v26  ;;  %v685_v35 = vsel %vm532_vm2, %v644_v18, 0.0  ;;  %v650_v3 = vmul.f32 %v1219_v32, %v1219_v32 }
  0xf4   : > { %v678_v8 = vadd.f32 %v677_v5, %v676_v2  ;;  %v579_v9 = vadd.f32 %v578_v6, %v577_v1  ;;  %v930_v10 = vpop.f32.mrf.mxu0  ;;  %v1301_v34 = vpop.f32.mrf.mxu1 }
  0xf5   : > { %544 = vst.msk [vmem:[%s1202_s16 + $0x58] sm:$0xff] %vm532_vm2, %v930_v10  ;;  %v681_v19 = vsel %vm532_vm2, %v642_v7, 0.0  ;;  %v645_v28 = vmul.f32 %v930_v10, %v930_v10  ;;  %v586_v36 = vsel %vm532_vm2, %v930_v10, 0.0  ;;  %560 = vst.msk [vmem:[%s1202_s16 + $0xd8] sm:$0xff] %vm532_vm2, %v1301_v34  ;;  %v651_v10 = vmul.f32 %v1238_v47, %v1238_v47 }
  0xf6   : > { %v581_v14 = vadd.f32 %v580_v13, %v579_v9  ;;  %v680_v15 = vadd.f32 %v679_v12, %v678_v8  ;;  %v440_v16 = vpop.f32.mrf.mxu0  ;;  %v1310_v42 = vpop.f32.mrf.mxu1  ;;  %v596_v9 = vsel %vm532_vm2, %v1219_v32, 0.0  ;;  %v600_v32 = vsel %vm532_vm2, %v1210_v25, 0.0 }
  0xf7   : > { %542 = vst.msk [vmem:[%s1202_s16 + $0x48] sm:$0xff] %vm532_vm2, %v440_v16  ;;  %v582_v20 = vsel %vm532_vm2, %v440_v16, 0.0  ;;  %v643_v21 = vmul.f32 %v440_v16, %v440_v16  ;;  %v687_v43 = vsel %vm532_vm2, %v645_v28, 0.0  ;;  %558 = vst.msk [vmem:[%s1202_s16 + $0xc8] sm:$0xff] %vm532_vm2, %v1310_v42  ;;  %v598_v16 = vsel %vm532_vm2, %v1238_v47, 0.0 }
  0xf8   : > { %v682_v22 = vadd.f32 %v681_v19, %v680_v15  ;;  %v583_v23 = vadd.f32 %v582_v20, %v581_v14  ;;  %v933_v24 = vpop.f32.mrf.mxu0  ;;  %v1319_v49 = vpop.f32.mrf.mxu1  ;;  %v652_v14 = vmul.f32 %v1210_v25, %v1210_v25  ;;  %v697_v15 = vsel %vm532_vm2, %v650_v3, 0.0 }
  0xf9   : > { %v683_v29 = vsel %vm532_vm2, %v643_v21, 0.0  ;;  %547 = vst.msk [vmem:[%s1202_s16 + $0x70] sm:$0xff] %vm532_vm2, %v933_v24  ;;  %v648_v50 = vmul.f32 %v933_v24, %v933_v24  ;;  %563 = vst.msk [vmem:[%s1202_s16 + $0xf0] sm:$0xff] %vm532_vm2, %v1319_v49  ;;  %v592_v58 = vsel %vm532_vm2, %v933_v24, 0.0  ;;  %v653_v20 = vmul.f32 %v1229_v40, %v1229_v40 }
  0xfa   : > { %v585_v30 = vadd.f32 %v584_v27, %v583_v23  ;;  %v684_v31 = vadd.f32 %v683_v29, %v682_v22  ;;  %v453_v33 = vpop.f32.mrf.mxu0  ;;  %v1328_v57 = vpop.f32.mrf.mxu1  ;;  %v699_v21 = vsel %vm532_vm2, %v651_v10, 0.0  ;;  %v701_v24 = vsel %vm532_vm2, %v652_v14, 0.0 }
  0xfb   : > { %545 = vst.msk [vmem:[%s1202_s16 + $0x60] sm:$0xff] %vm532_vm2, %v453_v33  ;;  %v646_v37 = vmul.f32 %v453_v33, %v453_v33  ;;  %v588_v44 = vsel %vm532_vm2, %v453_v33, 0.0  ;;  %561 = vst.msk [vmem:[%s1202_s16 + $0xe0] sm:$0xff] %vm532_vm2, %v1328_v57  ;;  %v693_v1 = vsel %vm532_vm2, %v648_v50, 0.0  ;;  %v602_v27 = vsel %vm532_vm2, %v1229_v40, 0.0 }
  0xfc   : > { %v686_v38 = vadd.f32 %v685_v35, %v684_v31  ;;  %v587_v39 = vadd.f32 %v586_v36, %v585_v30  ;;  %v934_v41 = vpop.f32.mrf.mxu0  ;;  %v1335_v0 = vpop.f32.mrf.mxu1  ;;  %v654_v47 = vmul.f32 %v1256_v61, %v1256_v61  ;;  %v703_v30 = vsel %vm532_vm2, %v653_v20, 0.0 }
  0xfd   : > { %548 = vst.msk [vmem:[%s1202_s16 + $0x78] sm:$0xff] %vm532_vm2, %v934_v41  ;;  %v689_v51 = vsel %vm532_vm2, %v646_v37, 0.0  ;;  %v649_v59 = vmul.f32 %v934_v41, %v934_v41  ;;  %v594_v2 = vsel %vm532_vm2, %v934_v41, 0.0  ;;  %564 = vst.msk [vmem:[%s1202_s16 + $0xf8] sm:$0xff] %vm532_vm2, %v1335_v0  ;;  %v604_v25 = vsel %vm532_vm2, %v1256_v61, 0.0 }
  0xfe   : > { %v589_v45 = vadd.f32 %v588_v44, %v587_v39  ;;  %v688_v46 = vadd.f32 %v687_v43, %v686_v38  ;;  %v456_v48 = vpop.f32.mrf.mxu0  ;;  %v1344_v7 = vpop.f32.mrf.mxu1  ;;  %v655_v31 = vmul.f32 %v1274_v11, %v1274_v11  ;;  %v656_v36 = vmul.f32 %v1247_v53, %v1247_v53 }
  0xff   : > { %546 = vst.msk [vmem:[%s1202_s16 + $0x68] sm:$0xff] %vm532_vm2, %v456_v48  ;;  %v590_v52 = vsel %vm532_vm2, %v456_v48, 0.0  ;;  %v647_v54 = vmul.f32 %v456_v48, %v456_v48  ;;  %v695_v8 = vsel %vm532_vm2, %v649_v59, 0.0  ;;  %562 = vst.msk [vmem:[%s1202_s16 + $0xe8] sm:$0xff] %vm532_vm2, %v1344_v7  ;;  %v705_v40 = vsel %vm532_vm2, %v654_v47, 0.0 }
 0x100   : > { %v690_v55 = vadd.f32 %v689_v51, %v688_v46  ;;  %v591_v56 = vadd.f32 %v590_v52, %v589_v45  ;;  %v606_v37 = vsel %vm532_vm2, %v1274_v11, 0.0  ;;  %v608_v41 = vsel %vm532_vm2, %v1247_v53, 0.0 }
 0x101   : > { %v691_v60 = vsel %vm532_vm2, %v647_v54, 0.0  ;;  %v657_v61 = vmul.f32 %v1265_v4, %v1265_v4  ;;  %v707_v43 = vsel %vm532_vm2, %v655_v31, 0.0  ;;  %v709_v46 = vsel %vm532_vm2, %v656_v36, 0.0 }
 0x102   : > { %v593_v62 = vadd.f32 %v592_v58, %v591_v56  ;;  %v692_v63 = vadd.f32 %v691_v60, %v690_v55  ;;  %v610_v48 = vsel %vm532_vm2, %v1265_v4, 0.0  ;;  %v658_v11 = vmul.f32 %v1292_v26, %v1292_v26 }
 0x103   : > { %v711_v52 = vsel %vm532_vm2, %v657_v61, 0.0  ;;  %v612_v53 = vsel %vm532_vm2, %v1292_v26, 0.0  ;;  %v659_v54 = vmul.f32 %v1310_v42, %v1310_v42  ;;  %v660_v58 = vmul.f32 %v1283_v17, %v1283_v17 }
 0x104   : > { %v595_v5 = vadd.f32 %v594_v2, %v593_v62  ;;  %v694_v6 = vadd.f32 %v693_v1, %v692_v63  ;;  %v713_v4 = vsel %vm532_vm2, %v658_v11, 0.0  ;;  %v614_v59 = vsel %vm532_vm2, %v1310_v42, 0.0 }
 0x105   : > { %v616_v63 = vsel %vm532_vm2, %v1283_v17, 0.0  ;;  %v661_v26 = vmul.f32 %v1301_v34, %v1301_v34  ;;  %v715_v1 = vsel %vm532_vm2, %v659_v54, 0.0  ;;  %v662_v42 = vmul.f32 %v1328_v57, %v1328_v57 }
 0x106   : > { %v696_v12 = vadd.f32 %v695_v8, %v694_v6  ;;  %v597_v13 = vadd.f32 %v596_v9, %v595_v5  ;;  %v717_v5 = vsel %vm532_vm2, %v660_v58, 0.0  ;;  %v618_v6 = vsel %vm532_vm2, %v1301_v34, 0.0 }
 0x107   : > { %v719_v10 = vsel %vm532_vm2, %v661_v26, 0.0  ;;  %v620_v17 = vsel %vm532_vm2, %v1328_v57, 0.0  ;;  %v721_v34 = vsel %vm532_vm2, %v662_v42, 0.0  ;;  %v665_v57 = vmul.f32 %v1335_v0, %v1335_v0 }
 0x108   : > { %v599_v18 = vadd.f32 %v598_v16, %v597_v13  ;;  %v698_v19 = vadd.f32 %v697_v15, %v696_v12  ;;  %v663_v12 = vmul.f32 %v1344_v7, %v1344_v7  ;;  %v664_v15 = vmul.f32 %v1319_v49, %v1319_v49 }
 0x109   : > { %v622_v16 = vsel %vm532_vm2, %v1344_v7, 0.0  ;;  %v727_v7 = vsel %vm532_vm2, %v665_v57, 0.0 }
 0x10a   : > { %v601_v22 = vadd.f32 %v600_v32, %v599_v18  ;;  %v700_v23 = vadd.f32 %v699_v21, %v698_v19  ;;  %v624_v32 = vsel %vm532_vm2, %v1319_v49, 0.0  ;;  %v723_v20 = vsel %vm532_vm2, %v663_v12, 0.0 }
 0x10c   : > { %v702_v28 = vadd.f32 %v701_v24, %v700_v23  ;;  %v603_v29 = vadd.f32 %v602_v27, %v601_v22  ;;  %v725_v23 = vsel %vm532_vm2, %v664_v15, 0.0  ;;  %v626_v24 = vsel %vm532_vm2, %v1335_v0, 0.0 }
 0x10e   : > { %v605_v33 = vadd.f32 %v604_v25, %v603_v29  ;;  %v704_v35 = vadd.f32 %v703_v30, %v702_v28 }
 0x110   : > { %v706_v38 = vadd.f32 %v705_v40, %v704_v35  ;;  %v607_v39 = vadd.f32 %v606_v37, %v605_v33 }
 0x112   : > { %v609_v44 = vadd.f32 %v608_v41, %v607_v39  ;;  %v708_v45 = vadd.f32 %v707_v43, %v706_v38 }
 0x114   : > { %v710_v50 = vadd.f32 %v709_v46, %v708_v45  ;;  %v611_v51 = vadd.f32 %v610_v48, %v609_v44 }
 0x116   : > { %v613_v55 = vadd.f32 %v612_v53, %v611_v51  ;;  %v712_v56 = vadd.f32 %v711_v52, %v710_v50 }
 0x118   : > { %v714_v60 = vadd.f32 %v713_v4, %v712_v56  ;;  %v615_v62 = vadd.f32 %v614_v59, %v613_v55 }
 0x11a   : > { %v617_v2 = vadd.f32 %v616_v63, %v615_v62  ;;  %v716_v3 = vadd.f32 %v715_v1, %v714_v60 }
 0x11c   : > { %v718_v8 = vadd.f32 %v717_v5, %v716_v3  ;;  %v619_v9 = vadd.f32 %v618_v6, %v617_v2 }
 0x11e   : > { %v621_v13 = vadd.f32 %v620_v17, %v619_v9  ;;  %v720_v14 = vadd.f32 %v719_v10, %v718_v8 }
 0x120   : > { %v722_v18 = vadd.f32 %v721_v34, %v720_v14  ;;  %v623_v19 = vadd.f32 %v622_v16, %v621_v13 }
 0x122   : > { %v625_v21 = vadd.f32 %v624_v32, %v623_v19  ;;  %v724_v22 = vadd.f32 %v723_v20, %v722_v18 }
 0x124   : > { %v627_v27 = vadd.f32 %v626_v24, %v625_v21  ;;  %v726_v47 = vadd.f32 %v725_v23, %v724_v22 }
 0x126   : > { %v628_v28 = vrot.slane %v627_v27, 4  ;;  %v728_v29 = vadd.f32 %v727_v7, %v726_v47 }
 0x128   : > { %v629_v49 = vadd.f32 %v628_v28, %v627_v27  ;;  %v729_v30 = vrot.slane %v728_v29, 4 }
 0x12a   : > { %v630_v25 = vrot.slane %v629_v49, 2  ;;  %v730_v31 = vadd.f32 %v729_v30, %v728_v29 }
 0x12c   : > { %v631_v33 = vadd.f32 %v630_v25, %v629_v49  ;;  %v731_v35 = vrot.slane %v730_v31, 2 }
 0x12e   : > { %v632_v36 = vrot.slane %v631_v33, 1  ;;  %v732_v40 = vadd.f32 %v731_v35, %v730_v31 }
 0x130   : > { %v733_v37 = vrot.slane %v732_v40, 1  ;;  %v633_v0 = vadd.f32 %v632_v36, %v631_v33 }
 0x132   : > { %v734_v38 = vadd.f32 %v733_v37, %v732_v40 }
 0x134   : > { %v736_v39 = vsel %vm735_vm3, %v633_v0, %v734_v38 }
 0x135   : > { %738 = vst.msk [vmem:[%s172_s20] sm:$0x3] %vm737_vm4, %v736_v39 }
 0x136   : > { %1030 = shalt.err (!%p1027_p3)
}
 0x137   : > { %s1031_s28 = scalar_lea.hbm %s1433_s27, 32  ;;  %s1035_s9 = scalar_lea.hbm %s1471_s3, 64 }
 0x138   : > { %p1032_p4 = scmp.ne.s32.totalorder %s1433_s27, %s1031_s28  ;;  %p1036_p9 = scmp.lt.s32.totalorder %s1433_s27, %s1471_s3 }
 0x139   : > { %p1037_p10 = scmp.lt.s32.totalorder %s1035_s9, %s1031_s28 }
 0x13a   : > { %p1033_p7 = pnand %p1032_p4, %p1135_p5 }
 0x13b   : > { %p1038_p11 = por %p1037_p10, %p1036_p9 }
 0x13c   : > { %p1034_p8 = pneg %p1033_p7 }
 0x13e   : > { %p1039_p12 = pnand %p1038_p11, %p1034_p8 }
 0x140   : > { %1042 = shalt.err (!%p1039_p12)
}
 0x141   : > { %959 = dma.vmem_to_hbm [thread:$0]  (%p1135_p5), %s763_s24, 32, %s1433_s27, %s745_s29  }
 0x142 PF: > { %p965_p13 = scmp.ge.s32.totalorder %s1077_s15, 2  ;;  %s782_s16 = sand.u32 1, %s1065_s12  }
 0x143   : > { %s783_s17 = scalar_lea.sflag [#allocation3], %s782_s16 }
 0x144   : > { %p962_p0 = pnand %p965_p13, %p1139_p6 }
 0x146   : > { %p963_p1 = pneg %p962_p0 }
 0x148   : > { %1060 = dma.done.wait (%p963_p1), %s783_s17, 32  }
 0x149   : > { %1062 = vsyncadd (%p963_p1), %s783_s17, 4294967264  ;;  %p14_p2 = scmp.ge.s32.totalorder %s1123_s18, 4   ;;  %s1474_s12 = smov %s1069_s13 }
 0x14a   : > { %s1475_s13 = smov %s1073_s14  ;;  %s1476_s14 = smov %s1133_s21 }
 0x14b   : > { %s1477_s15 = smov %s1123_s18  ;;  %16 = sbr.rel (!%p14_p2) target bundleno = 3 (0x3), region = 75 }
 0x150   :  { %788 = vsyncpa [#allocation3], 1 }
 0x151   :  { %790 = vsyncpa [#allocation3 + $0x1], 1 }

</bundles_post_ra>
